<compile_context>
chip_gen: v7x
topology: tpu7x:2x2x1
jax: 0.10.0
libtpu: 0.0.40
codegen_flags: <defaults>
</compile_context>

<pallas_src>
import functools

import jax
import jax.numpy as jnp
from jax.experimental import pallas as pl
from jax.experimental.pallas import tpu as pltpu


def _nce_kernel(q_ref, k_ref, o_ref, *, inv_T):
    """One (batch-tile, row-tile) grid step.

    q_ref: (Bt, TQ, D) query rows of this tile
    k_ref: (Bt, P,  D) all keys of these batch elements (resident across row tiles)
    o_ref: (Bt, TQ)    per-row NCE loss (lane-dense)
    """
    tq = q_ref.shape[1]
    r0 = pl.program_id(1) * tq               # global row offset of this q tile
    if tq % 8 == 0:
        r0 = pl.multiple_of(r0, tq)
    neg_fill = jnp.float32(-10.0 * inv_T)    # masked_fill(-10.0) already / T

    q = q_ref[...]                           # (Bt, TQ, D) native dtype
    q32 = q.astype(jnp.float32)
    # Fold the temperature into q: scale in f32, cast back to the native MXU
    # dtype (avoids an extra low-precision rounding before the exp path).
    q_s = (q32 * inv_T).astype(q.dtype)

    # l_pos / T via a direct row-wise dot of each query against its matching
    # key row: O(TQ*D) work instead of extracting the (P, TQ) diagonal.
    # (Rounding differs by O(eps) from the MXU diagonal of s_t; well inside
    # tolerance.)
    k_diag = k_ref[:, pl.ds(r0, tq), :].astype(jnp.float32)        # (Bt, TQ, D)
    pos_t = jnp.sum(q32 * k_diag, axis=-1) * inv_T                 # (Bt, TQ) f32

    # All-pairs logits / T as k . q^T: contract the feature axis so TQ lands on
    # lanes -> every epilogue reduction and the output store is lane-dense.
    s_t = jax.lax.dot_general(
        k_ref[...], q_s,
        dimension_numbers=(((2,), (2,)), ((0,), (0,))),
        preferred_element_type=jnp.float32,
    )                                                              # (Bt, P, TQ)

    # CrossEntropy(cat([l_pos, l_neg.masked_fill(diag, -10)]) / T, target=0):
    # the masked diagonal entry is replaced in the multiset by the appended
    # l_pos (which IS that diagonal), so per query column
    #     loss = logsumexp(s_t column  U  {-10/T}) - pos
    # and no diagonal mask / iota / where is needed at all.  The explicit
    # exp(-10/T - m) term is kept so results stay comparable to the reference.
    m = jnp.maximum(jnp.max(s_t, axis=1), neg_fill)                # (Bt, TQ)
    sum_e = (jnp.sum(jnp.exp(s_t - m[:, None, :]), axis=1)
             + jnp.exp(neg_fill - m))                              # (Bt, TQ)
    o_ref[...] = (m + jnp.log(sum_e) - pos_t).astype(o_ref.dtype)


def _divisors(n):
    out = set()
    i = 1
    while i * i <= n:
        if n % i == 0:
            out.add(i)
            out.add(n // i)
        i += 1
    return sorted(out)


def _pick_tiles(B, P, D, itemsize, budget_bytes):
    """Choose (Bt, TQ, k_buffer_count) so the live per-step VMEM set
    (s_t f32 + ~2 live f32 temporaries + double-buffered q/k/out blocks)
    fits inside `budget_bytes`."""

    def footprint(bt, tq, k_bufs):
        logits = 3 * bt * P * tq * 4                 # s_t + ~2 live f32 temps
        k_blk = k_bufs * bt * P * D * itemsize
        q_blk = 2 * bt * tq * D * itemsize
        o_blk = 2 * bt * tq * 4
        return logits + k_blk + q_blk + o_blk

    # Single-buffer the k block when double-buffering it alone would eat a big
    # slice of the budget (its index_map only depends on b: the one exposed
    # refetch per batch tile is cheap relative to the per-b compute).
    k_bufs = 2
    if 2 * P * D * itemsize > budget_bytes // 4:
        k_bufs = 1

    divs = _divisors(P)
    # Prefer 128/256-aligned row tiles (full MXU lane width), largest first.
    pref = [d for d in sorted(divs, reverse=True) if d == P or d % 128 == 0]
    ok8 = [d for d in sorted(divs, reverse=True) if d % 8 == 0]

    tq = None
    for cand in pref:
        if footprint(1, cand, k_bufs) <= budget_bytes:
            tq = cand
            break
    if tq is None:
        for cand in ok8:
            if footprint(1, cand, k_bufs) <= budget_bytes:
                tq = cand
                break
    if tq is None:
        tq = min(ok8) if ok8 else P   # give up on the budget; still correct

    # Small-P / overhead-bound regime: pack several batch elements per step
    # (each step otherwise costs ~0.35 us of fixed overhead vs tiny compute).
    bt = 1
    if tq == P and P * tq * 4 <= (2 << 20):
        for cand in sorted(_divisors(B), reverse=True):
            if cand * P <= 4096 and footprint(cand, tq, k_bufs) <= budget_bytes:
                bt = cand
                break
    return bt, tq, k_bufs


def learned_patch_nce_loss(
    feat_q,
    feat_k,
    *,
    batch_size,
    nce_T=0.07,
    nce_includes_all_negatives_from_minibatch=False,
    compute_dtype=None,
):
    """Pallas implementation of LearnedPatchNCELoss.forward (neg_sample=None path).

    feat_q, feat_k: (N, dim).  Returns per-sample loss of shape (N,) in f32.
    """
    # TODO(synk): neg_sample != None path (external negatives, no diagonal
    # handling) is not wired up; it is the same matmul without the -10/T term.
    # TODO(synk): no custom_vjp backward is defined; use under jax.grad needs a
    # backward kernel or a pure-JAX fallback.
    # TODO(synk): for the all-negatives path with extremely large N (B=1, P=N)
    # an online-softmax over key-column tiles would replace the full (P, TQ)
    # logits per step.
    feat_k = jax.lax.stop_gradient(feat_k)  # .detach()

    N, D = feat_q.shape
    B = 1 if nce_includes_all_negatives_from_minibatch else batch_size
    assert N % B == 0
    P = N // B

    if compute_dtype is not None and feat_q.dtype != compute_dtype:
        # PatchNCE features are typically L2-normalized, so bf16 inputs keep
        # the logits well within tolerance while halving HBM->VMEM bytes and
        # using the fast bf16 MXU path.  Off by default to preserve the
        # module's exact numerics (softmax math is always f32 in-kernel).
        feat_q = feat_q.astype(compute_dtype)
        feat_k = feat_k.astype(compute_dtype)

    q = feat_q.reshape(B, P, D)
    k = feat_k.reshape(B, P, D)
    itemsize = q.dtype.itemsize

    # VMEM budget derived from the actual chip (v5e/v6e: 128 MiB, v7x: 64 MiB);
    # raise the scoped limit accordingly (v5e's default is only 16 MiB).
    try:
        vmem_cap = int(pltpu.get_tpu_info().vmem_capacity_bytes)
    except Exception:
        vmem_cap = 64 * 1024 * 1024          # conservative (v7x physical)
    vmem_limit = (vmem_cap * 3) // 4
    budget = max(vmem_limit - (4 << 20), 8 << 20)   # headroom for misc scratch

    bt, tq, k_bufs = _pick_tiles(B, P, D, itemsize, budget)

    k_index_map = lambda b, r: (b, 0, 0)
    # k is indexed only by b: it stays VMEM-resident across the inner row axis.
    k_spec = pl.BlockSpec((bt, P, D), k_index_map)
    if k_bufs == 1:
        try:
            k_spec = pl.BlockSpec((bt, P, D), k_index_map,
                                  pipeline_mode=pl.Buffered(1))
        except Exception:
            k_spec = pl.BlockSpec((bt, P, D), k_index_map)

    out = pl.pallas_call(
        functools.partial(_nce_kernel, inv_T=1.0 / nce_T),
        grid=(B // bt, P // tq),
        in_specs=[
            pl.BlockSpec((bt, tq, D), lambda b, r: (b, r, 0)),
            k_spec,
        ],
        out_specs=pl.BlockSpec((bt, tq), lambda b, r: (b, r)),
        out_shape=jax.ShapeDtypeStruct((B, P), jnp.float32),
        # Both axes independent; B is the outer axis so the megacore split
        # prefers it (each core then keeps its own resident k block).
        compiler_params=pltpu.CompilerParams(
            dimension_semantics=("parallel", "parallel"),
            vmem_limit_bytes=int(vmem_limit),
        ),
    )(q, k)
    return out.reshape(N)


def _reference_loss(feat_q, feat_k, *, batch_size, nce_T=0.07, all_neg=False):
    """Pure-JAX transcription of the PyTorch forward (for validation)."""
    N, D = feat_q.shape
    l_pos = jnp.sum(feat_q * feat_k, axis=-1, keepdims=True)  # (N, 1)
    B = 1 if all_neg else batch_size
    q = feat_q.reshape(B, -1, D)
    k = feat_k.reshape(B, -1, D)
    P = q.shape[1]
    l_neg = jnp.einsum("bpd,bqd->bpq", q, k,
                       precision=jax.lax.Precision.HIGHEST)
    eye = jnp.eye(P, dtype=bool)[None, :, :]
    l_neg = jnp.where(eye, -10.0, l_neg).reshape(-1, P)
    out = jnp.concatenate([l_pos, l_neg], axis=1) / nce_T
    lse = jax.scipy.special.logsumexp(out, axis=1)
    return lse - out[:, 0]


if __name__ == "__main__":
    key = jax.random.PRNGKey(0)
    kq, kk = jax.random.split(key)

    batch_size = 2
    npatches = 8
    dim = 32
    N = batch_size * npatches  # feat_q is (N, dim), as in the PyTorch module

    feat_q = jax.random.normal(kq, (N, dim), dtype=jnp.float32)
    feat_k = jax.random.normal(kk, (N, dim), dtype=jnp.float32)

    # Default path (batch_dim_for_bmm = batch_size).
    loss = learned_patch_nce_loss(feat_q, feat_k, batch_size=batch_size, nce_T=0.07)
    loss = jax.block_until_ready(loss)
    ref = _reference_loss(feat_q, feat_k, batch_size=batch_size, nce_T=0.07)
    assert loss.shape == (N,)
    assert jnp.allclose(loss, ref, atol=1e-3, rtol=1e-3), (loss, ref)

    # nce_includes_all_negatives_from_minibatch=True path (B=1, P=N).
    loss_all = learned_patch_nce_loss(
        feat_q, feat_k, batch_size=batch_size, nce_T=0.07,
        nce_includes_all_negatives_from_minibatch=True)
    loss_all = jax.block_until_ready(loss_all)
    ref_all = _reference_loss(feat_q, feat_k, batch_size=batch_size,
                              nce_T=0.07, all_neg=True)
    assert loss_all.shape == (N,)
    assert jnp.allclose(loss_all, ref_all, atol=1e-3, rtol=1e-3), (loss_all, ref_all)

    print("KERNEL_OK")
</pallas_src>

<mosaic_0001>
module attributes {stable_mosaic.version = 11 : i64} {
  func.func @_nce_kernel(%arg0: i32, %arg1: i32, %arg2: memref<2x8x32xf32, #tpu.memory_space<vmem>>, %arg3: memref<2x8x32xf32, #tpu.memory_space<vmem>>, %arg4: memref<2x8xf32, #tpu.memory_space<vmem>>) attributes {dimension_semantics = [#tpu.dimension_semantics<parallel>, #tpu.dimension_semantics<parallel>], iteration_bounds = array<i64: 1, 1>, scalar_prefetch = 0 : i64, scratch_operands = 0 : i64, tpu.core_type = #tpu.core_type<tc>, window_params = [{transform_indices = @transform_0, window_bounds = array<i64: 2, 8, 32>}, {transform_indices = @transform_1, window_bounds = array<i64: 2, 8, 32>}, {transform_indices = @transform_2, window_bounds = array<i64: 2, 8>}]} {
    %c8_i32 = arith.constant 8 : i32
    %0 = arith.muli %arg1, %c8_i32 : i32
    %1 = tpu.assume_multiple %0, 8 : i32
    %c0 = arith.constant 0 : index
    %c0_0 = arith.constant 0 : index
    %c0_1 = arith.constant 0 : index
    %2 = vector.load %arg2[%c0, %c0_0, %c0_1] : memref<2x8x32xf32, #tpu.memory_space<vmem>>, vector<2x8x32xf32>
    %cst = arith.constant 14.2857141 : f32
    %3 = vector.broadcast %cst : f32 to vector<2x8x32xf32>
    %4 = arith.mulf %2, %3 : vector<2x8x32xf32>
    %c0_2 = arith.constant 0 : index
    %5 = arith.index_cast %1 : i32 to index
    %c0_3 = arith.constant 0 : index
    %6 = vector.load %arg3[%c0_2, %5, %c0_3] : memref<2x8x32xf32, #tpu.memory_space<vmem>>, vector<2x8x32xf32>
    %7 = arith.mulf %2, %6 : vector<2x8x32xf32>
    %cst_4 = arith.constant dense<0.000000e+00> : vector<2x8xf32>
    %8 = vector.multi_reduction <add>, %7, %cst_4 [2] : vector<2x8x32xf32> to vector<2x8xf32>
    %cst_5 = arith.constant 14.2857141 : f32
    %9 = vector.broadcast %cst_5 : f32 to vector<2x8xf32>
    %10 = arith.mulf %8, %9 : vector<2x8xf32>
    %c0_6 = arith.constant 0 : index
    %c0_7 = arith.constant 0 : index
    %c0_8 = arith.constant 0 : index
    %11 = vector.load %arg3[%c0_6, %c0_7, %c0_8] : memref<2x8x32xf32, #tpu.memory_space<vmem>>, vector<2x8x32xf32>
    %cst_9 = arith.constant dense<0.000000e+00> : vector<2x8x8xf32>
    %12 = tpu.matmul %11, %4, %cst_9 {dimension_numbers = #tpu.dot_dimension_numbers<[2], [2], [1], [1], [0, 0, 0, 1, 1, 1], [0], [0]>} : vector<2x8x32xf32>, vector<2x8x32xf32>, vector<2x8x8xf32> -> vector<2x8x8xf32>
    %cst_10 = arith.constant dense<0xFF800000> : vector<2x8xf32>
    %13 = vector.multi_reduction <maximumf>, %12, %cst_10 [1] : vector<2x8x8xf32> to vector<2x8xf32>
    %cst_11 = arith.constant -142.857147 : f32
    %14 = vector.broadcast %cst_11 : f32 to vector<2x8xf32>
    %15 = arith.maximumf %13, %14 : vector<2x8xf32>
    %16 = vector.shape_cast %15 : vector<2x8xf32> to vector<2x1x8xf32>
    %17 = vector.broadcast %16 : vector<2x1x8xf32> to vector<2x8x8xf32>
    %18 = arith.subf %12, %17 : vector<2x8x8xf32>
    %19 = math.exp %18 : vector<2x8x8xf32>
    %cst_12 = arith.constant dense<0.000000e+00> : vector<2x8xf32>
    %20 = vector.multi_reduction <add>, %19, %cst_12 [1] : vector<2x8x8xf32> to vector<2x8xf32>
    %cst_13 = arith.constant -142.857147 : f32
    %21 = vector.broadcast %cst_13 : f32 to vector<2x8xf32>
    %22 = arith.subf %21, %15 : vector<2x8xf32>
    %23 = math.exp %22 : vector<2x8xf32>
    %24 = arith.addf %20, %23 : vector<2x8xf32>
    %25 = math.log %24 : vector<2x8xf32>
    %26 = arith.addf %15, %25 : vector<2x8xf32>
    %27 = arith.subf %26, %10 : vector<2x8xf32>
    %c0_14 = arith.constant 0 : index
    %c0_15 = arith.constant 0 : index
    %28 = vector.load %arg4[%c0_14, %c0_15] : memref<2x8xf32, #tpu.memory_space<vmem>>, vector<2x8xf32>
    tpu.vector_store %arg4[%c0_14, %c0_15], %27 {strides = array<i32>} : memref<2x8xf32, #tpu.memory_space<vmem>>, vector<2x8xf32>,
    return
  }
  func.func @transform_0(%arg0: i32, %arg1: i32) -> (i32, i32, i32) {
    %c0_i32 = arith.constant 0 : i32
    %c0_i32_0 = arith.constant 0 : i32
    return %arg0, %arg1, %c0_i32 : i32, i32, i32
  }
  func.func @transform_1(%arg0: i32, %arg1: i32) -> (i32, i32, i32) {
    %c0_i32 = arith.constant 0 : i32
    %c0_i32_0 = arith.constant 0 : i32
    %c0_i32_1 = arith.constant 0 : i32
    return %arg0, %c0_i32, %c0_i32_0 : i32, i32, i32
  }
  func.func @transform_2(%arg0: i32, %arg1: i32) -> (i32, i32) {
    %c0_i32 = arith.constant 0 : i32
    return %arg0, %arg1 : i32, i32
  }
}

</mosaic_0001>

<bundles_post_ra>
// kernel: tpu_custom_call.1
= control target key start
LH: loop header
LB: loop body
LE: loop exit
PB: predicated region body
PF: predicated region fallthrough
CT: control target
= control target key end

     0   :  { %7 = vsyncpa [#allocation3], 0  ;;  %s475_s0 = inlined_call_operand.hbm [shape: f32[2,8,32], index: 0, kind: input, shape index: {}]   ;;  %s476_s1 = inlined_call_operand.hbm [shape: f32[2,8,32], index: 1, kind: input, shape index: {}]   ;;  %s477_s2 = inlined_call_operand.hbm [shape: f32[2,8], index: 2, kind: output, shape index: {}]  }
   0x1   :  { %8 = vsyncpa [#allocation6], 0 }
   0x2   :  { %9 = vsyncpa [#allocation4], 0  ;;  %s413_s9 = smov [#allocation2]   ;;  %s341_s13 = scalar_lea.hbm %s475_s0, 256 }
   0x3   :  { %s15_s10 = sshll.u32 %s413_s9, 4  ;;  %p342_p0 = scmp.ne.s32.totalorder %s475_s0, %s341_s13  ;;  %s16_s10 = int_to_ptr.vmem [resolvable:$true] %s15_s10 }
   0x4   :  { %p345_p1 = scmp.lt.u32.totalorder %s341_s13, %s475_s0 }
   0x6   :  { %p347_p2 = pnand %p345_p1, %p342_p0 }
   0x8   :  { %350 = shalt.err (!%p347_p2)
}
   0x9   :  { %s351_s18 = scalar_lea.vmem %s16_s10, 256  ;;  %p356_p4 = scmp.lt.s32.totalorder %s16_s10, %s16_s10 }
   0xa   :  { %p352_p3 = scmp.ne.s32.totalorder %s16_s10, %s351_s18  ;;  %p357_p5 = scmp.lt.s32.totalorder %s351_s18, %s351_s18 }
   0xc   :  { %p358_p6 = por %p357_p5, %p356_p4 }
   0xe   :  { %p359_p7 = pnand %p358_p6, %p352_p3 }
  0x10   :  { %362 = shalt.err (!%p359_p7)
}
  0x11   :  { %s414_s19 = smov 128   ;;  %s415_s20 = smov 8  }
  0x12   :  { %21 = dma.hbm_to_vmem [thread:$0]  %s475_s0, 256, %s16_s10, [#allocation3], %s414_s19, %s414_s19, %s415_s20  }
  0x13   :  { %s416_s23 = smov [#allocation5]   ;;  %s363_s27 = scalar_lea.hbm %s476_s1, 256 }
  0x14   :  { %s27_s24 = sshll.u32 %s416_s23, 4  ;;  %p364_p8 = scmp.ne.s32.totalorder %s476_s1, %s363_s27  ;;  %s28_s24 = int_to_ptr.vmem [resolvable:$true] %s27_s24 }
  0x15   :  { %p367_p9 = scmp.lt.u32.totalorder %s363_s27, %s476_s1 }
  0x17   :  { %p369_p10 = pnand %p367_p9, %p364_p8 }
  0x19   :  { %372 = shalt.err (!%p369_p10)
}
  0x1a   :  { %s373_s4 = scalar_lea.vmem %s28_s24, 256  ;;  %p378_p12 = scmp.lt.s32.totalorder %s28_s24, %s28_s24 }
  0x1b   :  { %p374_p11 = scmp.ne.s32.totalorder %s28_s24, %s373_s4  ;;  %p379_p13 = scmp.lt.s32.totalorder %s373_s4, %s373_s4 }
  0x1d   :  { %p380_p0 = por %p379_p13, %p378_p12 }
  0x1f   :  { %p381_p1 = pnand %p380_p0, %p374_p11 }
  0x21   :  { %384 = shalt.err (!%p381_p1)
}
  0x22   :  { %33 = dma.hbm_to_vmem [thread:$0]  %s476_s1, 256, %s28_s24, [#allocation6], %s414_s19, %s414_s19, %s415_s20  }
  0x23   :  { %407 = dma.done.wait [#allocation3], 256  }
  0x24   :  { %408 = vsyncadd [#allocation3], 4294967040 }
  0x25   :  { %409 = dma.done.wait [#allocation6], 256  }
  0x26   :  { %410 = vsyncadd [#allocation6], 4294967040  ;;  %v417_v0 = vmov 0.0   ;;  %vm418_vm0 = vmmov 0   ;;  %v41_v1 = vld [vmem:[#allocation2] sm:$0xff]  ;;  %vm50_vm1 = vcmask 261120   ;;  %v266_v60 = vlaneseq }
  0x27   :  { %312 = vmatprep.subr.mxu0 %v417_v0  ;;  %317 = vmatprep.subr.mxu1 %v417_v0  ;;  %v42_v2 = vld [vmem:[#allocation2 + $0x8] sm:$0xff]  ;;  %v43_v3 = vmul.f32 14.285714, %v41_v1  ;;  %v59_v5 = vld [vmem:[#allocation5] sm:$0xff]  ;;  %v60_v6 = vld [vmem:[#allocation5 + $0x8] sm:$0xff]  ;;  %vm213_vm2 = vcmask 64512  }
  0x28   :  { %314 = vmatprep.mubr.msk.f32.mxu0 %vm418_vm0, %v417_v0  ;;  %319 = vmatprep.mubr.msk.f32.mxu1 %vm418_vm0, %v417_v0  ;;  %v44_v4 = vmul.f32 14.285714, %v42_v2  ;;  %v49_v7 = vmul.f32 %v60_v6, %v42_v2  ;;  %v48_v8 = vmul.f32 %v59_v5, %v41_v1  ;;  %v267_v61 = vand.u32 127, %v266_v60  ;;  %s419_s1 = smov [#allocation7]  }
  0x29   :  { %313 = vmatpush3.xpose.msk.msra.mxu0 %vm50_vm1, %v43_v3  ;;  %v269_v62 = vshrl.u32 %v266_v60, 7  ;;  %s294_s6 = sshll.u32 %s419_s1, 4  ;;  %vm283_vm3 = vcmask 1041409   ;;  %vm286_vm4 = vcmask 58368   ;;  %s295_s6 = int_to_ptr.vmem [resolvable:$true] %s294_s6 }
  0x2a   :  { %318 = vmatpush3.xpose.msk.msra.mxu1 %vm50_vm1, %v44_v4  ;;  %v54_v9 = vsel %vm50_vm1, %v49_v7, 0.0  ;;  %v51_v10 = vsel %vm50_vm1, %v48_v8, 0.0  ;;  %s385_s7 = scalar_lea.vmem %s295_s6, 32  ;;  %p390_p3 = scmp.lt.s32.totalorder %s295_s6, %s295_s6 }
  0x2b   :  { %55 = vadd.xlane.f32.xlu0 %v54_v9  ;;  %v270_v1 = vsub.s32 %v267_v61, %v269_v62  ;;  %p386_p2 = scmp.ne.s32.totalorder %s295_s6, %s385_s7  ;;  %p391_p4 = scmp.lt.s32.totalorder %s385_s7, %s385_s7 }
  0x2c   :  { %315 = vmatmul.mubr.msk.f32.vlgmr.msra.gmra.mrb[0].mxu0 %vm50_vm1, %v59_v5 }
  0x2d   :  { %320 = vmatmul.mubr.msk.f32.vlgmr.msra.gmra.mrb[0].mxu1 %vm50_vm1, %v60_v6  ;;  %p392_p5 = por %p391_p4, %p390_p3 }
  0x2f   :  { %52 = vadd.xlane.f32.xlu0 %v51_v10  ;;  %p393_p6 = pnand %p392_p5, %p386_p2 }
  0xb8   :  { %v56_v59 = vpop.xlane.xlu0 %55 }
  0xb9   :  { %v58_v2 = vmul.f32 14.285714, %v56_v59 }
  0xbb   :  { %v275_v8 = vrot.slane %v58_v2, %v270_v1 }
  0xbc   :  { %v53_v63 = vpop.xlane.xlu0 %52 }
  0xbd   :  { %v57_v3 = vmul.f32 14.285714, %v53_v63 }
  0xbf   :  { %v271_v10 = vrot.slane %v57_v3, %v270_v1 }
  0xff   :  { %v133_v11 = vpop.f32.mrb[0].mxu0 }
 0x100   :  { %v209_v12 = vpop.f32.mrb[0].mxu1  ;;  %v214_v13 = vsel %vm213_vm2, %v133_v11, -inf  ;;  %v316_v16 = vpop.f32.mrb[1].mxu0 }
 0x101   :  { %v221_v14 = vsel %vm213_vm2, %v209_v12, -inf  ;;  %v321_v15 = vpop.f32.mrb[1].mxu1  ;;  %v215_v17 = vrot.slane %v214_v13, 4 }
 0x102   :  { %v222_v18 = vrot.slane %v221_v14, 4 }
 0x103   :  { %v216_v19 = vmax.f32 %v214_v13, %v215_v17 }
 0x104   :  { %v223_v20 = vmax.f32 %v221_v14, %v222_v18 }
 0x105   :  { %v217_v21 = vrot.slane %v216_v19, 2 }
 0x106   :  { %v224_v22 = vrot.slane %v223_v20, 2 }
 0x107   :  { %v218_v23 = vmax.f32 %v216_v19, %v217_v21 }
 0x108   :  { %v225_v24 = vmax.f32 %v223_v20, %v224_v22 }
 0x109   :  { %v219_v25 = vrot.slane %v218_v23, 1 }
 0x10a   :  { %v226_v26 = vrot.slane %v225_v24, 1 }
 0x10b   :  { %v220_v27 = vmax.f32 %v218_v23, %v219_v25 }
 0x10c   :  { %v227_v28 = vmax.f32 %v225_v24, %v226_v26 }
 0x10d   :  { %v228_v29 = vmax.f32 %v220_v27, -142.85715 }
 0x10e   :  { %v229_v30 = vmax.f32 %v227_v28, -142.85715 }
 0x10f   :  { %v230_v31 = vsub.f32 %v133_v11, %v228_v29  ;;  %v250_v35 = vsub.f32 -142.85715, %v228_v29 }
 0x110   :  { %v231_v32 = vsub.f32 %v209_v12, %v229_v30  ;;  %v251_v36 = vsub.f32 -142.85715, %v229_v30 }
 0x111   :  { %v232_v33 = vmul.f32 1.442695, %v230_v31  ;;  %v252_v37 = vmul.f32 1.442695, %v250_v35 }
 0x112   :  { %v234_v34 = vmul.f32 1.442695, %v231_v32  ;;  %v254_v40 = vmul.f32 1.442695, %v251_v36 }
 0x113   :  { %329 = vpow2.f32 %v232_v33 }
 0x114   :  { %331 = vpow2.f32 %v234_v34 }
 0x115   :  { %333 = vpow2.f32 %v252_v37 }
 0x116   :  { %335 = vpow2.f32 %v254_v40 }
 0x11d   :  { %v330_v38 = vpop.eup %329 }
 0x11e   :  { %v236_v39 = vsel %vm213_vm2, %v330_v38, 0.0  ;;  %v332_v41 = vpop.eup %331 }
 0x11f   :  { %v237_v42 = vrot.slane %v236_v39, 4  ;;  %v243_v43 = vsel %vm213_vm2, %v332_v41, 0.0  ;;  %v334_v54 = vpop.eup %333 }
 0x120   :  { %v244_v45 = vrot.slane %v243_v43, 4  ;;  %v336_v57 = vpop.eup %335 }
 0x121   :  { %v238_v44 = vadd.f32 %v237_v42, %v236_v39 }
 0x122   :  { %v245_v47 = vadd.f32 %v244_v45, %v243_v43 }
 0x123   :  { %v239_v46 = vrot.slane %v238_v44, 2 }
 0x124   :  { %v246_v49 = vrot.slane %v245_v47, 2 }
 0x125   :  { %v240_v48 = vadd.f32 %v239_v46, %v238_v44 }
 0x126   :  { %v247_v51 = vadd.f32 %v246_v49, %v245_v47 }
 0x127   :  { %v241_v50 = vrot.slane %v240_v48, 1 }
 0x128   :  { %v248_v52 = vrot.slane %v247_v51, 1 }
 0x129   :  { %v242_v53 = vadd.f32 %v241_v50, %v240_v48 }
 0x12a   :  { %v249_v55 = vadd.f32 %v248_v52, %v247_v51 }
 0x12b   :  { %v256_v56 = vadd.f32 %v334_v54, %v242_v53 }
 0x12c   :  { %v257_v58 = vadd.f32 %v336_v57, %v249_v55 }
 0x12d   :  { %337 = vlog2.f32 %v256_v56 }
 0x12e   :  { %339 = vlog2.f32 %v257_v58 }
 0x137   :  { %v338_v0 = vpop.eup %337 }
 0x138   :  { %v259_v4 = vmul.f32 0.6931472, %v338_v0  ;;  %v340_v5 = vpop.eup %339 }
 0x139   :  { %v261_v6 = vmul.f32 0.6931472, %v340_v5 }
 0x13a   :  { %v262_v9 = vadd.f32 %v259_v4, %v228_v29 }
 0x13b   :  { %v263_v7 = vadd.f32 %v261_v6, %v229_v30 }
 0x13c   :  { %v278_v13 = vsub.f32 %v262_v9, %v271_v10 }
 0x13d   :  { %v279_v11 = vsub.f32 %v263_v7, %v275_v8 }
 0x13f   :  { %v282_v12 = vrot.slane %v279_v11, 7 }
 0x141   :  { %v284_v14 = vsel %vm283_vm3, %v282_v12, %v278_v13 }
 0x142   :  { %287 = vst.msk [vmem:[#allocation7] sm:$0x3] %vm286_vm4, %v284_v14 }
 0x143   :  { %396 = shalt.err (!%p393_p6)
}
 0x144   :  { %s397_s10 = scalar_lea.hbm %s477_s2, 32 }
 0x145   :  { %p398_p7 = scmp.ne.s32.totalorder %s477_s2, %s397_s10  ;;  %p401_p8 = scmp.lt.u32.totalorder %s397_s10, %s477_s2 }
 0x147   :  { %p403_p9 = pnand %p401_p8, %p398_p7 }
 0x149   :  { %406 = shalt.err (!%p403_p9)
}
 0x14a   :  { %297 = dma.vmem_to_hbm [thread:$0]  %s295_s6, 32, %s477_s2, [#allocation4]  }
 0x14b   :  { %411 = dma.done.wait [#allocation4], 32  }
 0x14c   :  { %412 = vsyncadd [#allocation4], 4294967264 }
 0x14d   :  { %301 = vsyncpa [#allocation3], 1 }
 0x14e   :  { %302 = vsyncpa [#allocation6], 1 }
 0x14f   :  { %303 = vsyncpa [#allocation4], 1 }

</bundles_post_ra>
